<compile_context>
chip_gen: v7x
topology: tpu7x:2x2x1
jax: 0.10.0
libtpu: 0.0.40
codegen_flags: <defaults>
</compile_context>

<pallas_src>
from collections import namedtuple

import jax
import jax.numpy as jnp
from jax.experimental import pallas as pl
from jax.experimental.pallas import tpu as pltpu

Outputs = namedtuple("Outputs", ["value"])


def _round_up(x, m):
    return ((x + m - 1) // m) * m


def _value_mlp_kernel(x_ref, w1_ref, b1_ref, w2_ref, b2_ref, w3_ref, b3_ref,
                      out_ref):
    mm_dtype = w1_ref.dtype
    x = x_ref[...].astype(mm_dtype)                          # (TB, D)

    # hidden layer 1: MXU matmul (bf16 in, f32 acc); bias + ReLU in f32 (VPU)
    h1 = jnp.dot(x, w1_ref[...], preferred_element_type=jnp.float32)
    h1 = jnp.maximum(h1 + b1_ref[...], 0.0)                  # (TB, Hp) f32

    # hidden layer 2
    h2 = jnp.dot(h1.astype(mm_dtype), w2_ref[...],
                 preferred_element_type=jnp.float32)
    h2 = jnp.maximum(h2 + b2_ref[...], 0.0)                  # (TB, Hp) f32

    # value head: (TB, Hp) * (1, Hp) on the VPU + lane reduction on the XLU
    # (replaces an N=1 MXU matmul), plus SMEM scalar bias.
    v = jnp.sum(h2 * w3_ref[...], axis=-1, keepdims=True) + b3_ref[0, 0]
    out_ref[...] = v.astype(out_ref.dtype)


def prepare_params(params, matmul_dtype=jnp.bfloat16, lane=128):
    """One-time parameter preprocessing (outside the hot path).

    Zero-pads the hidden dim to a multiple of `lane` (lane-dense activations),
    casts the two big matmul weights to `matmul_dtype` (full MXU rate, half
    the HBM/VMEM bytes), keeps biases and the head weights in f32 (elementwise
    work stays f32), and reshapes w3 to a (1, Hp) row for the VPU reduction.
    """
    w1, b1, w2, b2, w3, b3 = params
    H = w1.shape[1]
    Hp = _round_up(H, lane)
    pad = Hp - H
    if pad:
        w1 = jnp.pad(w1, ((0, 0), (0, pad)))
        b1 = jnp.pad(b1, ((0, 0), (0, pad)))
        w2 = jnp.pad(w2, ((0, pad), (0, pad)))
        b2 = jnp.pad(b2, ((0, 0), (0, pad)))
        w3 = jnp.pad(w3, ((0, pad), (0, 0)))
    w1 = w1.astype(matmul_dtype)
    w2 = w2.astype(matmul_dtype)
    b1 = b1.astype(jnp.float32)
    b2 = b2.astype(jnp.float32)
    w3r = jnp.reshape(w3, (1, Hp)).astype(jnp.float32)       # row for VPU mul
    b3 = b3.astype(jnp.float32)
    return (w1, b1, w2, b2, w3r, b3)


def _choose_batch_tile(B, D, Hp, weight_bytes, budget_bytes=24 * 1024 * 1024):
    """Largest power-of-two batch tile (<= 512) whose VMEM footprint fits.

    Budget targets v7x (64 MiB physical VMEM, 32 MiB default scoped) with
    headroom; v5e/v6e (128 MiB) are strictly looser.
    """
    tb = 512
    while tb > 8:
        streamed = 2 * (tb * D * 4 + tb * 4)      # double-buffered ob + out
        activations = 3 * tb * Hp * 4             # h1/h2 f32 + bf16 temp (rough)
        if weight_bytes + streamed + activations <= budget_bytes:
            break
        tb //= 2
    return min(tb, _round_up(B, 8))


def value_function_forward(ob, prepared):
    """Pallas forward for ValueFunction. ob: (B, obs_dim) f32."""
    w1, b1, w2, b2, w3r, b3 = prepared
    B, D = ob.shape
    Hp = w1.shape[1]

    weight_bytes = sum(int(a.size) * a.dtype.itemsize
                       for a in (w1, b1, w2, b2, w3r))
    TB = _choose_batch_tile(B, D, Hp, weight_bytes)
    B_pad = _round_up(B, TB)
    if B_pad != B:
        ob = jnp.pad(ob, ((0, B_pad - B), (0, 0)))
    n_tiles = B_pad // TB

    # Weights/biases: full-array blocks with a constant index_map -> resident
    # in VMEM across all grid steps (no re-DMA).
    def resident(a):
        return pl.BlockSpec(a.shape, lambda i: (0,) * a.ndim)

    value_2d = pl.pallas_call(
        _value_mlp_kernel,
        out_shape=jax.ShapeDtypeStruct((B_pad, 1), jnp.float32),
        grid=(n_tiles,),
        in_specs=[
            pl.BlockSpec((TB, D), lambda i: (i, 0)),     # ob tile, streamed
            resident(w1), resident(b1),
            resident(w2), resident(b2),
            resident(w3r),
            pl.BlockSpec(memory_space=pltpu.SMEM),       # b3 scalar bias
        ],
        out_specs=pl.BlockSpec((TB, 1), lambda i: (i, 0)),
        compiler_params=pltpu.CompilerParams(
            dimension_semantics=("parallel",),
            vmem_limit_bytes=32 * 1024 * 1024),
    )(ob, w1, b1, w2, b2, w3r, b3)

    # self.base(ob).squeeze(-1)  (+ drop batch padding)
    value = jnp.squeeze(value_2d, axis=-1)[:B]
    return Outputs(value=value)


def init_params(key, obs_dim, hidden):
    """Deterministic parameter init (synthetic, no checkpoint load)."""
    k1, k2, k3 = jax.random.split(key, 3)
    scale1 = 1.0 / jnp.sqrt(obs_dim)
    scale2 = 1.0 / jnp.sqrt(hidden)
    w1 = jax.random.normal(k1, (obs_dim, hidden), jnp.float32) * scale1
    b1 = jnp.zeros((1, hidden), jnp.float32)
    w2 = jax.random.normal(k2, (hidden, hidden), jnp.float32) * scale2
    b2 = jnp.zeros((1, hidden), jnp.float32)
    w3 = jax.random.normal(k3, (hidden, 1), jnp.float32) * scale2
    b3 = jnp.zeros((1, 1), jnp.float32)
    return (w1, b1, w2, b2, w3, b3)


def _reference_forward(ob, params):
    w1, b1, w2, b2, w3, b3 = params
    h1 = jnp.maximum(ob @ w1 + b1, 0.0)
    h2 = jnp.maximum(h1 @ w2 + b2, 0.0)
    return jnp.squeeze(h2 @ w3 + b3, axis=-1)


if __name__ == "__main__":
    B, OBS_DIM, HIDDEN = 8, 16, 32

    key = jax.random.PRNGKey(0)
    k_ob, k_params = jax.random.split(key)
    ob = jax.random.normal(k_ob, (B, OBS_DIM), jnp.float32)
    params = init_params(k_params, OBS_DIM, HIDDEN)
    prepared = prepare_params(params)          # pad H -> 128, cast bf16, once

    out = value_function_forward(ob, prepared)
    value = jax.block_until_ready(out.value)

    assert value.shape == (B,), value.shape
    ref = _reference_forward(ob, params)
    # bf16 matmul inputs (with f32 accumulation) vs. a pure-f32 reference:
    # loose tolerance accounts for bf16 weight/activation rounding.
    assert jnp.allclose(value, ref, atol=5e-2, rtol=5e-2), (
        float(jnp.max(jnp.abs(value - ref))))

    print("KERNEL_OK")
</pallas_src>

<mosaic_0001>
module attributes {stable_mosaic.version = 11 : i64} {
  func.func @_value_mlp_kernel(%arg0: i32, %arg1: memref<8x16xf32, #tpu.memory_space<vmem>>, %arg2: memref<16x128xbf16, #tpu.memory_space<vmem>>, %arg3: memref<1x128xf32, #tpu.memory_space<vmem>>, %arg4: memref<128x128xbf16, #tpu.memory_space<vmem>>, %arg5: memref<1x128xf32, #tpu.memory_space<vmem>>, %arg6: memref<1x128xf32, #tpu.memory_space<vmem>>, %arg7: memref<1x1xf32, #tpu.memory_space<smem>>, %arg8: memref<8x1xf32, #tpu.memory_space<vmem>>) attributes {dimension_semantics = [#tpu.dimension_semantics<parallel>], iteration_bounds = array<i64: 1>, scalar_prefetch = 0 : i64, scratch_operands = 0 : i64, tpu.core_type = #tpu.core_type<tc>, window_params = [{transform_indices = @transform_0, window_bounds = array<i64: 8, 16>}, {pipeline_mode = #tpu.pipeline_mode<synchronous>, transform_indices = @transform_1, window_bounds = array<i64: 16, 128>}, {pipeline_mode = #tpu.pipeline_mode<synchronous>, transform_indices = @transform_2, window_bounds = array<i64: 1, 128>}, {pipeline_mode = #tpu.pipeline_mode<synchronous>, transform_indices = @transform_3, window_bounds = array<i64: 128, 128>}, {pipeline_mode = #tpu.pipeline_mode<synchronous>, transform_indices = @transform_4, window_bounds = array<i64: 1, 128>}, {pipeline_mode = #tpu.pipeline_mode<synchronous>, transform_indices = @transform_5, window_bounds = array<i64: 1, 128>}, {transform_indices = @transform_6, window_bounds = array<i64: 1, 1>}, {transform_indices = @transform_7, window_bounds = array<i64: 8, 1>}]} {
    %c0 = arith.constant 0 : index
    %c0_0 = arith.constant 0 : index
    %0 = vector.load %arg1[%c0, %c0_0] : memref<8x16xf32, #tpu.memory_space<vmem>>, vector<8x16xf32>
    %1 = arith.truncf %0 : vector<8x16xf32> to vector<8x16xbf16>
    %c0_1 = arith.constant 0 : index
    %c0_2 = arith.constant 0 : index
    %2 = vector.load %arg2[%c0_1, %c0_2] : memref<16x128xbf16, #tpu.memory_space<vmem>>, vector<16x128xbf16>
    %cst = arith.constant dense<0.000000e+00> : vector<8x128xf32>
    %3 = tpu.matmul %1, %2, %cst {dimension_numbers = #tpu.dot_dimension_numbers<[1], [0], [0], [1], [0, 0, 1, 1], [], []>} : vector<8x16xbf16>, vector<16x128xbf16>, vector<8x128xf32> -> vector<8x128xf32>
    %c0_3 = arith.constant 0 : index
    %c0_4 = arith.constant 0 : index
    %4 = vector.load %arg3[%c0_3, %c0_4] : memref<1x128xf32, #tpu.memory_space<vmem>>, vector<1x128xf32>
    %5 = vector.broadcast %4 : vector<1x128xf32> to vector<8x128xf32>
    %6 = arith.addf %3, %5 : vector<8x128xf32>
    %cst_5 = arith.constant 0.000000e+00 : f32
    %7 = vector.broadcast %cst_5 : f32 to vector<8x128xf32>
    %8 = arith.maximumf %6, %7 : vector<8x128xf32>
    %9 = arith.truncf %8 : vector<8x128xf32> to vector<8x128xbf16>
    %c0_6 = arith.constant 0 : index
    %c0_7 = arith.constant 0 : index
    %10 = vector.load %arg4[%c0_6, %c0_7] : memref<128x128xbf16, #tpu.memory_space<vmem>>, vector<128x128xbf16>
    %cst_8 = arith.constant dense<0.000000e+00> : vector<8x128xf32>
    %11 = tpu.matmul %9, %10, %cst_8 {dimension_numbers = #tpu.dot_dimension_numbers<[1], [0], [0], [1], [0, 0, 1, 1], [], []>} : vector<8x128xbf16>, vector<128x128xbf16>, vector<8x128xf32> -> vector<8x128xf32>
    %c0_9 = arith.constant 0 : index
    %c0_10 = arith.constant 0 : index
    %12 = vector.load %arg5[%c0_9, %c0_10] : memref<1x128xf32, #tpu.memory_space<vmem>>, vector<1x128xf32>
    %13 = vector.broadcast %12 : vector<1x128xf32> to vector<8x128xf32>
    %14 = arith.addf %11, %13 : vector<8x128xf32>
    %cst_11 = arith.constant 0.000000e+00 : f32
    %15 = vector.broadcast %cst_11 : f32 to vector<8x128xf32>
    %16 = arith.maximumf %14, %15 : vector<8x128xf32>
    %c0_12 = arith.constant 0 : index
    %c0_13 = arith.constant 0 : index
    %17 = vector.load %arg6[%c0_12, %c0_13] : memref<1x128xf32, #tpu.memory_space<vmem>>, vector<1x128xf32>
    %18 = vector.broadcast %17 : vector<1x128xf32> to vector<8x128xf32>
    %19 = arith.mulf %16, %18 : vector<8x128xf32>
    %cst_14 = arith.constant dense<0.000000e+00> : vector<8xf32>
    %20 = vector.multi_reduction <add>, %19, %cst_14 [1] : vector<8x128xf32> to vector<8xf32>
    %21 = vector.shape_cast %20 : vector<8xf32> to vector<8x1xf32>
    %c0_15 = arith.constant 0 : index
    %c0_16 = arith.constant 0 : index
    %22 = memref.load %arg7[%c0_15, %c0_16] : memref<1x1xf32, #tpu.memory_space<smem>>
    %23 = vector.broadcast %22 : f32 to vector<8x1xf32>
    %24 = arith.addf %21, %23 : vector<8x1xf32>
    %c0_17 = arith.constant 0 : index
    %c0_18 = arith.constant 0 : index
    %25 = vector.load %arg8[%c0_17, %c0_18] : memref<8x1xf32, #tpu.memory_space<vmem>>, vector<8x1xf32>
    tpu.vector_store %arg8[%c0_17, %c0_18], %24 {strides = array<i32>} : memref<8x1xf32, #tpu.memory_space<vmem>>, vector<8x1xf32>,
    return
  }
  func.func @transform_0(%arg0: i32) -> (i32, i32) {
    %c0_i32 = arith.constant 0 : i32
    %c0_i32_0 = arith.constant 0 : i32
    return %arg0, %c0_i32 : i32, i32
  }
  func.func @transform_1(%arg0: i32) -> (i32, i32) {
    %c0_i32 = arith.constant 0 : i32
    %c0_i32_0 = arith.constant 0 : i32
    %c0_i32_1 = arith.constant 0 : i32
    return %c0_i32, %c0_i32_0 : i32, i32
  }
  func.func @transform_2(%arg0: i32) -> (i32, i32) {
    %c0_i32 = arith.constant 0 : i32
    %c0_i32_0 = arith.constant 0 : i32
    %c0_i32_1 = arith.constant 0 : i32
    return %c0_i32, %c0_i32_0 : i32, i32
  }
  func.func @transform_3(%arg0: i32) -> (i32, i32) {
    %c0_i32 = arith.constant 0 : i32
    %c0_i32_0 = arith.constant 0 : i32
    %c0_i32_1 = arith.constant 0 : i32
    return %c0_i32, %c0_i32_0 : i32, i32
  }
  func.func @transform_4(%arg0: i32) -> (i32, i32) {
    %c0_i32 = arith.constant 0 : i32
    %c0_i32_0 = arith.constant 0 : i32
    %c0_i32_1 = arith.constant 0 : i32
    return %c0_i32, %c0_i32_0 : i32, i32
  }
  func.func @transform_5(%arg0: i32) -> (i32, i32) {
    %c0_i32 = arith.constant 0 : i32
    %c0_i32_0 = arith.constant 0 : i32
    %c0_i32_1 = arith.constant 0 : i32
    return %c0_i32, %c0_i32_0 : i32, i32
  }
  func.func @transform_6(%arg0: i32) -> (i32, i32) {
    %c0_i32 = arith.constant 0 : i32
    %c0_i32_0 = arith.constant 0 : i32
    %c0_i32_1 = arith.constant 0 : i32
    return %c0_i32, %c0_i32_0 : i32, i32
  }
  func.func @transform_7(%arg0: i32) -> (i32, i32) {
    %c0_i32 = arith.constant 0 : i32
    %c0_i32_0 = arith.constant 0 : i32
    return %arg0, %c0_i32 : i32, i32
  }
}

</mosaic_0001>

<bundles_post_ra>
// kernel: tpu_custom_call.1
= control target key start
LH: loop header
LB: loop body
LE: loop exit
PB: predicated region body
PF: predicated region fallthrough
CT: control target
= control target key end

     0   :  { %13 = vsyncpa [#allocation4], 0  ;;  %s503_s0 = inlined_call_operand.hbm [shape: f32[8,16], index: 0, kind: input, shape index: {}]   ;;  %s504_s1 = inlined_call_operand.hbm [shape: bf16[16,128], index: 1, kind: input, shape index: {}]   ;;  %s505_s2 = inlined_call_operand.vmem [shape: f32[1,128], index: 2, kind: input, shape index: {}]   ;;  %s506_s3 = inlined_call_operand.hbm [shape: bf16[128,128], index: 3, kind: input, shape index: {}]   ;;  %s507_s4 = inlined_call_operand.vmem [shape: f32[1,128], index: 4, kind: input, shape index: {}]   ;;  %s508_s5 = inlined_call_operand.vmem [shape: f32[1,128], index: 5, kind: input, shape index: {}]   ;;  %s509_s6 = inlined_call_operand.<no memory space> [shape: f32[1,1], index: 6, kind: input, shape index: {}]   ;;  %s510_s7 = inlined_call_operand.vmem [shape: f32[8,1], index: 7, kind: output, shape index: {}]  }
   0x1   :  { %14 = vsyncpa [#allocation6], 0  ;;  %s399_s24 = smov [#allocation5]   ;;  %s329_s28 = scalar_lea.hbm %s504_s1, 128 }
   0x2   :  { %s30_s25 = sshll.u32 %s399_s24, 4  ;;  %p330_p0 = scmp.ne.s32.totalorder %s504_s1, %s329_s28  ;;  %s31_s25 = int_to_ptr.vmem [resolvable:$true] %s30_s25 }
   0x3   :  { %p333_p1 = scmp.lt.u32.totalorder %s329_s28, %s504_s1 }
   0x5   :  { %p335_p2 = pnand %p333_p1, %p330_p0 }
   0x7   :  { %338 = shalt.err (!%p335_p2)
}
   0x8   :  { %s339_s10 = scalar_lea.vmem %s31_s25, 128  ;;  %p344_p4 = scmp.lt.s32.totalorder %s31_s25, %s31_s25 }
   0x9   :  { %p340_p3 = scmp.ne.s32.totalorder %s31_s25, %s339_s10  ;;  %p345_p5 = scmp.lt.s32.totalorder %s339_s10, %s339_s10 }
   0xb   :  { %p346_p6 = por %p345_p5, %p344_p4 }
   0xd   :  { %p347_p7 = pnand %p346_p6, %p340_p3 }
   0xf   :  { %350 = shalt.err (!%p347_p7)
}
  0x10   :  { %s400_s11 = smov 64   ;;  %s401_s12 = smov 4  }
  0x11   :  { %36 = dma.hbm_to_vmem [thread:$0]  %s504_s1, 128, %s31_s25, [#allocation6], %s400_s11, %s400_s11, %s401_s12  }
  0x12   :  { %s402_s15 = smov [#allocation3]   ;;  %s403_s17 = smov [#allocation7]  }
  0x13   :  { %s21_s16 = sshll.u32 %s402_s15, 4  ;;  %s44_s18 = sshll.u32 %s403_s17, 4  ;;  %s22_s16 = int_to_ptr.vmem [resolvable:$true] %s21_s16  ;;  %s45_s18 = int_to_ptr.vmem [resolvable:$true] %s44_s18 }
  0x14   :  { %s351_s21 = scalar_lea.hbm %s503_s0, 128 }
  0x15   :  { %p352_p8 = scmp.ne.s32.totalorder %s503_s0, %s351_s21  ;;  %p355_p9 = scmp.lt.u32.totalorder %s351_s21, %s503_s0 }
  0x17   :  { %p357_p10 = pnand %p355_p9, %p352_p8 }
  0x19   :  { %360 = shalt.err (!%p357_p10)
}
  0x1a   :  { %s361_s1 = scalar_lea.vmem %s22_s16, 128  ;;  %p366_p12 = scmp.lt.s32.totalorder %s22_s16, %s22_s16 }
  0x1b   :  { %p362_p11 = scmp.ne.s32.totalorder %s22_s16, %s361_s1  ;;  %p367_p13 = scmp.lt.s32.totalorder %s361_s1, %s361_s1 }
  0x1d   :  { %p368_p0 = por %p367_p13, %p366_p12 }
  0x1f   :  { %p369_p1 = pnand %p368_p0, %p362_p11 }
  0x21   :  { %372 = shalt.err (!%p369_p1)
}
  0x22   :  { %24 = dma.hbm_to_vmem [thread:$0]  %s503_s0, 128, %s22_s16, [#allocation4]  }
  0x23   :  { %s373_s30 = scalar_lea.hbm %s506_s3, 1024 }
  0x24   :  { %p374_p2 = scmp.ne.s32.totalorder %s506_s3, %s373_s30  ;;  %p377_p3 = scmp.lt.u32.totalorder %s373_s30, %s506_s3 }
  0x26   :  { %p379_p4 = pnand %p377_p3, %p374_p2 }
  0x28   :  { %382 = shalt.err (!%p379_p4)
}
  0x29   :  { %s383_s14 = scalar_lea.vmem %s45_s18, 1024  ;;  %p388_p6 = scmp.lt.s32.totalorder %s45_s18, %s45_s18 }
  0x2a   :  { %p384_p5 = scmp.ne.s32.totalorder %s45_s18, %s383_s14  ;;  %p389_p7 = scmp.lt.s32.totalorder %s383_s14, %s383_s14 }
  0x2c   :  { %p390_p8 = por %p389_p7, %p388_p6 }
  0x2e   :  { %p391_p9 = pnand %p390_p8, %p384_p5 }
  0x30   :  { %394 = shalt.err (!%p391_p9)
}
  0x31   :  { %50 = dma.hbm_to_vmem [thread:$0]  %s506_s3, 1024, %s45_s18, [#allocation6], %s400_s11, %s400_s11, %s401_s12  }
  0x32   :  { %395 = dma.done.wait [#allocation4], 128  }
  0x33   :  { %396 = vsyncadd [#allocation4], 4294967168 }
  0x34   :  { %397 = dma.done.wait [#allocation6], 1152  }
  0x35   :  { %398 = vsyncadd [#allocation6], 4294966144  ;;  %v404_v0 = vmov 0.0   ;;  %vm405_vm0 = vmmov 0   ;;  %v320_v1 = vld [vmem:[#allocation5] sm:$0xff]   ;;  %v67_v2 = vld [vmem:[#allocation3] sm:$0xff]  ;;  %v253_v29 = vstv %s509_s6 }
  0x36   :  { %287 = vmatprep.subr.bf16.mxu0 %v404_v0  ;;  %289 = vmatprep.mubr.msk.bf16.mxu0 %vm405_vm0, %v404_v0  ;;  %v68_v3 = vpack.c.bf16 %v67_v2, %v67_v2  ;;  %vm84_vm1 = vcmask 130048   ;;  %v321_v4 = vld [vmem:[#allocation7] sm:$0xff]   ;;  %v322_v5 = vld [vmem:[#allocation7 + $0x8] sm:$0xff]   ;;  %v323_v6 = vld [vmem:[#allocation7 + $0x10] sm:$0xff]   ;;  %vm255_vm2 = vcmask 7168  }
  0x37   :  { %293 = vmatprep.subr.bf16.mxu1 %v404_v0  ;;  %309 = vmatprep.mubr.msk.bf16.mxu1 %vm405_vm0, %v404_v0  ;;  %v324_v7 = vld [vmem:[#allocation7 + $0x18] sm:$0xff]   ;;  %v325_v8 = vld [vmem:[#allocation7 + $0x20] sm:$0xff]   ;;  %v326_v9 = vld [vmem:[#allocation7 + $0x28] sm:$0xff]  }
  0x38   :  { %288 = vmatpush3.bf16.msra.mxu0 %v320_v1  ;;  %294 = vmatpush3.bf16.msra.mxu1 %v321_v4  ;;  %v327_v10 = vld [vmem:[#allocation7 + $0x30] sm:$0xff]   ;;  %v328_v11 = vld [vmem:[#allocation7 + $0x38] sm:$0xff]  }
  0x39   :  { %295 = vmatprep.subr.bf16.mxu1 %v404_v0  ;;  %v263_v12 = vld [vmem:[%s505_s2] ss:$0 sm:$0xff] }
  0x3a   :  { %v266_v20 = vld [vmem:[%s507_s4] ss:$0 sm:$0xff] }
  0x3b   :  { %290 = vmatmul.mubr.msk.bf16.vlgmr.msra.gmra.mrb[0].mxu0 %vm84_vm1, %v68_v3  ;;  %v275_v25 = vld [vmem:[%s508_s5] ss:$0 sm:$0xff] }
  0x3c   :  { %296 = vmatpush3.bf16.msra.mxu1 %v322_v5 }
  0x3d   :  { %297 = vmatprep.subr.bf16.mxu1 %v404_v0 }
  0x40   :  { %298 = vmatpush3.bf16.msra.mxu1 %v323_v6 }
  0x41   :  { %299 = vmatprep.subr.bf16.mxu1 %v404_v0 }
  0x44   :  { %300 = vmatpush3.bf16.msra.mxu1 %v324_v7 }
  0x45   :  { %301 = vmatprep.subr.bf16.mxu1 %v404_v0 }
  0x48   :  { %302 = vmatpush3.bf16.msra.mxu1 %v325_v8 }
  0x49   :  { %303 = vmatprep.subr.bf16.mxu1 %v404_v0 }
  0x4c   :  { %304 = vmatpush3.bf16.msra.mxu1 %v326_v9 }
  0x4d   :  { %305 = vmatprep.subr.bf16.mxu1 %v404_v0 }
  0x50   :  { %306 = vmatpush3.bf16.msra.mxu1 %v327_v10 }
  0x51   :  { %307 = vmatprep.subr.bf16.mxu1 %v404_v0 }
  0x54   :  { %308 = vmatpush3.bf16.msra.mxu1 %v328_v11 }
 0x10e   :  { %v122_v13 = vpop.f32.mrb[0].mxu0 }
 0x10f   :  { %v123_v14 = vadd.f32 %v263_v12, %v122_v13  ;;  %v291_v15 = vpop.f32.mrb[1].mxu0 }
 0x110   :  { %v125_v16 = vpop.f32.mrb[2].mxu0 }
 0x111   :  { %v128_v17 = vmax.f32 %v123_v14, 0.0  ;;  %v292_v18 = vpop.f32.mrb[3].mxu0 }
 0x113   :  { %v129_v19 = vpack.c.bf16 %v128_v17, %v128_v17 }
 0x115   :  { %310 = vmatmul.mubr.bf16.vlgmr.msra.gmra.mrb[0].mxu1 %v129_v19 }
 0x1e8   :  { %v235_v21 = vpop.f32.mrb[0].mxu1 }
 0x1e9   :  { %v236_v22 = vadd.f32 %v266_v20, %v235_v21  ;;  %v311_v23 = vpop.f32.mrb[1].mxu1 }
 0x1ea   :  { %v238_v24 = vpop.f32.mrb[2].mxu1 }
 0x1eb   :  { %v241_v26 = vmax.f32 %v236_v22, 0.0  ;;  %v312_v27 = vpop.f32.mrb[3].mxu1 }
 0x1ed   :  { %v249_v28 = vmul.f32 %v275_v25, %v241_v26 }
 0x1ef   :  { %250 = vadd.xlane.f32.xlu0 %v249_v28 }
 0x27c   :  { %v251_v30 = vpop.xlane.xlu0 %250 }
 0x27d   :  { %v254_v31 = vadd.f32 %v253_v29, %v251_v30 }
 0x27f   :  { %256 = vst.msk [vmem:[%s510_s7] sm:$0xff] %vm255_vm2, %v254_v31 }
 0x280   :  { %261 = vsyncpa [#allocation4], 1 }
 0x281   :  { %262 = vsyncpa [#allocation6], 1 }

</bundles_post_ra>
